<compile_context>
chip_gen: v6e
topology: v6e:2x2x1
jax: 0.10.0
libtpu: 0.0.40
codegen_flags: <defaults>
</compile_context>

<pallas_src>
import math
from copy import deepcopy

import numpy as np
import jax
import jax.numpy as jnp
from jax.experimental import pallas as pl
from jax.experimental.pallas import tpu as pltpu


# ----------------------------------------------------------------------------
# Pure-python ports of the coloring utilities (identical semantics to the
# reference implementation; they only produce static index buffers).
# ----------------------------------------------------------------------------
def create_colored_matrix(input_generators, output_generators):
    assert len(input_generators) == len(output_generators)
    assert len(input_generators) > 0
    p = len(input_generators)
    n = len(input_generators[0])
    m = len(output_generators[0])
    colors = {}
    for i in range(n):
        for j in range(m):
            colors[i, j] = i * m + j
    while True:
        old_colors = colors.copy()
        for k in range(p):
            input_gen = input_generators[k]
            output_gen = output_generators[k]
            for i in range(n):
                for j in range(m):
                    colors[i, j] = min(colors[i, j], colors[input_gen[i], output_gen[j]])
                    colors[input_gen[i], output_gen[j]] = colors[i, j]
        if colors == old_colors:
            break
    colors_list = sorted(list(set(colors.values())))
    num_colors = len(colors_list)
    color_to_idx = {colors_list[i]: i for i in range(num_colors)}
    for k, v in colors.items():
        colors[k] = color_to_idx[v]
    assert min(colors.values()) == 0
    assert max(colors.values()) == num_colors - 1
    return colors


def create_colored_vector(output_generators):
    assert len(output_generators) > 0
    p = len(output_generators)
    m = len(output_generators[0])
    colors = {i: i for i in range(m)}
    while True:
        old_colors = colors.copy()
        for k in range(p):
            output_gen = output_generators[k]
            for i in range(m):
                colors[i] = min(colors[i], colors[output_gen[i]])
                colors[output_gen[i]] = colors[i]
        if colors == old_colors:
            break
    colors_list = sorted(list(set(colors.values())))
    num_colors = len(colors_list)
    color_to_idx = {colors_list[i]: i for i in range(num_colors)}
    for k, v in colors.items():
        colors[k] = color_to_idx[v]
    assert min(colors.values()) == 0
    assert max(colors.values()) == num_colors - 1
    return colors


# ----------------------------------------------------------------------------
# Helpers
# ----------------------------------------------------------------------------
def _round_up(x, m):
    return ((x + m - 1) // m) * m


def _vmem_budget_bytes():
    """Per-generation scoped-VMEM budget (physical capacity minus headroom)."""
    phys = 64 << 20  # v7x-safe fallback (smallest VMEM per TensorCore)
    try:
        info = pltpu.get_tpu_info()
        phys = int(getattr(info, "vmem_capacity_bytes", phys)) or phys
    except Exception:
        pass
    # ~25% headroom for compiler-internal scratch / semaphores; cap well under
    # the 128 MiB generations (v5e/v6e), ~48 MiB on v7x.
    return int(min((phys * 3) // 4, 100 << 20))


def _best_tile(dim, cap, quantum):
    """Largest-friendly tile (multiple of `quantum`, <= cap) minimizing padding."""
    dim = max(int(dim), 1)
    cap = max(quantum, (cap // quantum) * quantum)
    if dim <= cap:
        return _round_up(dim, quantum)          # single full tile, only alignment pad
    best_t, best_pad = quantum, None
    t = quantum
    while t <= cap:
        pad = (-dim) % t
        if best_pad is None or pad < best_pad or (pad == best_pad and t > best_t):
            best_t, best_pad = t, pad
        t += quantum
    return best_t


# ----------------------------------------------------------------------------
# Pallas kernels
# ----------------------------------------------------------------------------
def _linear_resident_kernel(x_ref, w_ref, b_ref, o_ref):
    # x_ref: (tm, Kp) caller dtype; w_ref: (Kp, Np) compute dtype (resident,
    # DMA'd once); b_ref: (1, Np) f32; o_ref: (tm, Np) f32.
    x = x_ref[...].astype(w_ref.dtype)          # in-kernel cast (VPU, hidden under MXU)
    acc = jnp.dot(x, w_ref[...], preferred_element_type=jnp.float32)
    o_ref[...] = (acc + b_ref[...]).astype(o_ref.dtype)


def _linear_tiled_kernel(x_ref, w_ref, b_ref, o_ref):
    # W is (K, N) in HBM -> a plain (tm,tk)@(tk,tn) matmul, no transposed RHS.
    # The f32 output block is resident across the K grid axis, so accumulate
    # directly into it (no scratch, no epilogue copy); bias added once at the end.
    k = pl.program_id(2)

    @pl.when(k == 0)
    def _():
        o_ref[...] = jnp.zeros_like(o_ref)

    x = x_ref[...].astype(w_ref.dtype)
    o_ref[...] += jnp.dot(x, w_ref[...], preferred_element_type=jnp.float32)

    @pl.when(k == pl.num_programs(2) - 1)
    def _():
        o_ref[...] += b_ref[...]


# ----------------------------------------------------------------------------
# y = x_flat @ W_kn + b   (W pre-transposed to (K, N); f32 accumulation)
# ----------------------------------------------------------------------------
def pallas_linear(x_flat, W_kn, b, *, force_tiled=False, tile_override=None):
    M, K = x_flat.shape
    K2, N = W_kn.shape
    assert K == K2, (x_flat.shape, W_kn.shape)
    assert b.shape == (N,)

    out_dtype = jnp.float32
    x_elt = jnp.dtype(x_flat.dtype).itemsize
    w_elt = jnp.dtype(W_kn.dtype).itemsize
    budget = _vmem_budget_bytes()

    Kp128 = _round_up(K, 128)
    Np128 = _round_up(N, 128)
    # Conservative: assume the pipeline double-buffers even the constant blocks.
    w_resident_bytes = 2 * (Kp128 * Np128 * w_elt + Np128 * 4)
    use_resident = (not force_tiled) and (w_resident_bytes <= budget // 2)

    if use_resident:
        # -------- Weights-resident path: 1-D grid over M, W fetched once. ----
        Kp, Np = Kp128, Np128
        per_row = 2 * (Kp * x_elt + Np * 4)            # double-buffered x + out rows
        tm_cap = max(8, ((budget - w_resident_bytes) // max(per_row, 1)) // 8 * 8)
        tm = min(512, tm_cap, _round_up(M, 8))
        Mp = _round_up(M, tm)

        x_p = x_flat
        if (Mp, Kp) != (M, K):
            x_p = jnp.pad(x_p, ((0, Mp - M), (0, Kp - K)))
        W_p = W_kn
        if (Kp, Np) != (K, N):
            W_p = jnp.pad(W_p, ((0, Kp - K), (0, Np - N)))
        b2d = jnp.pad(b.astype(jnp.float32), (0, Np - N)).reshape(1, Np)

        cost = pl.CostEstimate(
            flops=2 * Mp * Np * Kp, transcendentals=0,
            bytes_accessed=Mp * Kp * x_elt + Kp * Np * w_elt + Np * 4 + Mp * Np * 4)

        y_pad = pl.pallas_call(
            _linear_resident_kernel,
            out_shape=jax.ShapeDtypeStruct((Mp, Np), out_dtype),
            grid_spec=pltpu.PrefetchScalarGridSpec(
                num_scalar_prefetch=0,
                grid=(Mp // tm,),
                in_specs=[
                    pl.BlockSpec((tm, Kp), lambda i: (i, 0)),
                    pl.BlockSpec((Kp, Np), lambda i: (0, 0)),   # resident weights
                    pl.BlockSpec((1, Np), lambda i: (0, 0)),    # resident bias
                ],
                out_specs=pl.BlockSpec((tm, Np), lambda i: (i, 0)),
            ),
            compiler_params=pltpu.CompilerParams(
                dimension_semantics=("parallel",),
                vmem_limit_bytes=budget,
            ),
            cost_estimate=cost,
        )(x_p, W_p, b2d)
    else:
        # -------- Tiled fallback: (M, N, K) grid, reduction axis last. -------
        if tile_override is not None:
            tm, tn, tk = tile_override
        else:
            tm = _best_tile(M, 512, 8)
            tn = _best_tile(N, 512, 128)
            tk = _best_tile(K, 1024, 128)

            def _need(tm_, tn_, tk_):
                return (2 * (tm_ * tk_ * x_elt + tk_ * tn_ * w_elt + tn_ * 4)
                        + 2 * tm_ * tn_ * 4)

            while _need(tm, tn, tk) > budget and (tk > 128 or tn > 128 or tm > 8):
                if tk > 128:
                    tk = _round_up(max(tk // 2, 128), 128)
                elif tn > 128:
                    tn = _round_up(max(tn // 2, 128), 128)
                else:
                    tm = max(8, _round_up(tm // 2, 8))

        Mp, Np, Kp = _round_up(M, tm), _round_up(N, tn), _round_up(K, tk)

        x_p = x_flat
        if (Mp, Kp) != (M, K):
            x_p = jnp.pad(x_p, ((0, Mp - M), (0, Kp - K)))
        W_p = W_kn
        if (Kp, Np) != (K, N):
            W_p = jnp.pad(W_p, ((0, Kp - K), (0, Np - N)))
        b2d = jnp.pad(b.astype(jnp.float32), (0, Np - N)).reshape(1, Np)

        grid = (Mp // tm, Np // tn, Kp // tk)
        cost = pl.CostEstimate(
            flops=2 * Mp * Np * Kp, transcendentals=0,
            bytes_accessed=(Mp * Kp * x_elt * (Np // tn)
                            + Kp * Np * w_elt * (Mp // tm)
                            + Np * 4 + Mp * Np * 4))

        y_pad = pl.pallas_call(
            _linear_tiled_kernel,
            out_shape=jax.ShapeDtypeStruct((Mp, Np), out_dtype),
            grid_spec=pltpu.PrefetchScalarGridSpec(
                num_scalar_prefetch=0,
                grid=grid,
                in_specs=[
                    pl.BlockSpec((tm, tk), lambda i, j, k: (i, k)),
                    pl.BlockSpec((tk, tn), lambda i, j, k: (k, j)),  # (K,N) layout
                    # bias block index is independent of k -> fetched once per j
                    pl.BlockSpec((1, tn), lambda i, j, k: (0, j)),
                ],
                out_specs=pl.BlockSpec((tm, tn), lambda i, j, k: (i, j)),
            ),
            compiler_params=pltpu.CompilerParams(
                dimension_semantics=("parallel", "parallel", "arbitrary"),
                vmem_limit_bytes=budget,
            ),
            cost_estimate=cost,
        )(x_p, W_p, b2d)

    if y_pad.shape != (M, N):
        y_pad = y_pad[:M, :N]
    return y_pad


# ----------------------------------------------------------------------------
# LinearEquiv in JAX: parameter/index construction (glue) + Pallas forward.
# ----------------------------------------------------------------------------
class LinearEquivPallas:
    def __init__(self, in_generators, out_generators, in_channels, out_channels,
                 bias=True, key=None, compute_dtype=jnp.bfloat16):
        self.in_features = len(in_generators[0])
        self.out_features = len(out_generators[0])
        self.in_generators = deepcopy(in_generators)
        self.out_generators = deepcopy(out_generators)
        self.in_channels = in_channels
        self.out_channels = out_channels
        # bf16 operands hit MXU peak on v5e/v6e/v7x; accumulation stays f32
        # inside the kernel.  Pass jnp.float32 for bit-faithful f32 math.
        self.compute_dtype = compute_dtype

        self.colors_W = create_colored_matrix(in_generators, out_generators)
        self.colors_b = create_colored_vector(out_generators)
        self.num_colors_W = len(set(self.colors_W.values()))
        self.num_colors_b = len(set(self.colors_b.values()))
        self.num_weights_W = self.num_colors_W * in_channels * out_channels
        self.num_weights_b = self.num_colors_b * out_channels

        # Deterministic init (same bounds as the PyTorch reset_parameters).
        if key is None:
            key = jax.random.PRNGKey(0)
        kw, kb = jax.random.split(key)
        fan_in = self.in_features * self.in_channels
        a = math.sqrt(5)
        gain = math.sqrt(2.0 / (1.0 + a * a))          # leaky_relu gain
        bound_w = math.sqrt(3.0) * gain / math.sqrt(fan_in)
        self.weight = jax.random.uniform(
            kw, (self.num_weights_W,), jnp.float32, -bound_w, bound_w)
        if bias:
            bound_b = 1.0 / math.sqrt(fan_in)
            self.bias = jax.random.uniform(
                kb, (self.num_weights_b,), jnp.float32, -bound_b, bound_b)
        else:
            self.bias = None

        # Static index buffers (identical to the registered buffers).
        idx_weight = np.zeros(
            (self.out_features * out_channels, self.in_features * in_channels),
            dtype=np.int32)
        for i in range(out_channels):
            row_base = i * self.out_features
            for j in range(in_channels):
                col_base = j * self.in_features
                v_base = (i * in_channels + j) * self.num_colors_W
                for k, v in self.colors_W.items():
                    idx_weight[row_base + k[1], col_base + k[0]] = v_base + v
        self.idx_weight = jnp.asarray(idx_weight)

        idx_bias = np.zeros((self.out_features * out_channels,), dtype=np.int32)
        for i in range(out_channels):
            row_base = i * self.out_features
            v_base = i * self.num_colors_b
            for k, v in self.colors_b.items():
                idx_bias[row_base + k] = v_base + v
        self.idx_bias = jnp.asarray(idx_bias)

        # Dense W/b expansion is hoisted out of the per-call path.
        self.refresh_dense_params()

    def refresh_dense_params(self):
        """Re-expand tied parameters into dense W (K, N) and b (N,).

        Call again after any update to self.weight / self.bias."""
        W_nk = self.weight[self.idx_weight]            # (N, K) dense expansion
        if self.bias is not None:
            b = self.bias[self.idx_bias]
        else:
            b = jnp.zeros((self.out_features * self.out_channels,), jnp.float32)
        # One-time transpose to (K, N): the kernel then runs a plain
        # (tm,tk)@(tk,tn) MXU matmul with no per-tile transposed RHS.
        self.W_dense = jnp.asarray(W_nk).T.astype(self.compute_dtype)   # (K, N)
        self.b_dense = b.astype(jnp.float32)                            # f32 bias

    def __call__(self, x):
        # x: (..., in_channels, in_features)
        assert x.shape[-1] == self.in_features
        assert x.shape[-2] == self.in_channels
        lead = x.shape[:-2]
        # Flatten exactly like x.view(..., in_features * in_channels).
        x_flat = x.reshape((-1, self.in_features * self.in_channels))
        # No wrapper-side dtype cast: the kernel casts each x tile to the
        # compute dtype on the VPU (hidden under the MXU), avoiding an extra
        # HBM read+write pass over x.
        y_flat = pallas_linear(x_flat, self.W_dense, self.b_dense)
        return y_flat.reshape(*lead, self.out_channels, self.out_features)


def _reference_forward(layer, x):
    """Host-side float64 reference using the layer's stored compute-dtype W."""
    W = np.asarray(layer.W_dense, dtype=np.float64)        # (K, N)
    b = np.asarray(layer.b_dense, dtype=np.float64)
    lead = x.shape[:-2]
    xf = np.asarray(x, dtype=np.float64).reshape(
        -1, layer.in_features * layer.in_channels)
    y = xf @ W + b
    return y.reshape(*lead, layer.out_channels, layer.out_features)


if __name__ == "__main__":
    key = jax.random.PRNGKey(0)

    # --- Test 1: small shape, f32 compute, weights-resident path -------------
    n = 8
    cyc8 = [(i + 1) % n for i in range(n)]
    k1, k2, key = jax.random.split(key, 3)
    layer1 = LinearEquivPallas([cyc8], [cyc8], in_channels=4, out_channels=4,
                               bias=True, key=k1, compute_dtype=jnp.float32)
    x1 = jax.random.normal(k2, (2, 4, n), jnp.float32)
    y1 = jax.block_until_ready(layer1(x1))
    assert y1.shape == (2, 4, n)
    np.testing.assert_allclose(np.asarray(y1), _reference_forward(layer1, x1),
                               rtol=1e-4, atol=1e-4)

    # --- Test 2: larger K/N, default bf16 operands + f32 accumulation --------
    n_in, n_out = 96, 32
    cyc_in = [(i + 1) % n_in for i in range(n_in)]
    cyc_out = [(i + 1) % n_out for i in range(n_out)]
    k3, k4, key = jax.random.split(key, 3)
    layer2 = LinearEquivPallas([cyc_in], [cyc_out], in_channels=8, out_channels=8,
                               bias=True, key=k3)          # compute_dtype = bf16
    x2 = jax.random.normal(k4, (32, 8, n_in), jnp.float32)  # K=768, N=256 (resident)
    y2 = jax.block_until_ready(layer2(x2))
    assert y2.shape == (32, 8, n_out)
    np.testing.assert_allclose(np.asarray(y2), _reference_forward(layer2, x2),
                               rtol=3e-2, atol=3e-2)

    # --- Test 3: force the tiled (M,N,K)-grid fallback (large-W regime) ------
    k5, k6, k7 = jax.random.split(key, 3)
    xT = jax.random.normal(k5, (48, 384), jnp.float32)
    WT = (jax.random.normal(k6, (384, 256), jnp.float32) * 0.05).astype(jnp.bfloat16)
    bT = jax.random.normal(k7, (256,), jnp.float32) * 0.05
    yT = jax.block_until_ready(
        pallas_linear(xT, WT, bT, force_tiled=True, tile_override=(16, 128, 128)))
    refT = (np.asarray(xT, np.float64) @ np.asarray(WT, np.float64)
            + np.asarray(bT, np.float64))
    np.testing.assert_allclose(np.asarray(yT), refT, rtol=3e-2, atol=3e-2)

    print("KERNEL_OK")
</pallas_src>

<mosaic_0001>
module attributes {stable_mosaic.version = 11 : i64} {
  func.func @_linear_resident_kernel(%arg0: i32, %arg1: memref<8x128xf32, #tpu.memory_space<vmem>>, %arg2: memref<128x128xf32, #tpu.memory_space<vmem>>, %arg3: memref<1x128xf32, #tpu.memory_space<vmem>>, %arg4: memref<8x128xf32, #tpu.memory_space<vmem>>) attributes {dimension_semantics = [#tpu.dimension_semantics<parallel>], iteration_bounds = array<i64: 1>, scalar_prefetch = 0 : i64, scratch_operands = 0 : i64, tpu.core_type = #tpu.core_type<tc>, window_params = [{transform_indices = @transform_0, window_bounds = array<i64: 8, 128>}, {pipeline_mode = #tpu.pipeline_mode<synchronous>, transform_indices = @transform_1, window_bounds = array<i64: 128, 128>}, {pipeline_mode = #tpu.pipeline_mode<synchronous>, transform_indices = @transform_2, window_bounds = array<i64: 1, 128>}, {transform_indices = @transform_3, window_bounds = array<i64: 8, 128>}]} {
    %c0 = arith.constant 0 : index
    %c0_0 = arith.constant 0 : index
    %0 = vector.load %arg1[%c0, %c0_0] : memref<8x128xf32, #tpu.memory_space<vmem>>, vector<8x128xf32>
    %c0_1 = arith.constant 0 : index
    %c0_2 = arith.constant 0 : index
    %1 = vector.load %arg2[%c0_1, %c0_2] : memref<128x128xf32, #tpu.memory_space<vmem>>, vector<128x128xf32>
    %cst = arith.constant dense<0.000000e+00> : vector<8x128xf32>
    %2 = tpu.matmul %0, %1, %cst {dimension_numbers = #tpu.dot_dimension_numbers<[1], [0], [0], [1], [0, 0, 1, 1], [], []>} : vector<8x128xf32>, vector<128x128xf32>, vector<8x128xf32> -> vector<8x128xf32>
    %c0_3 = arith.constant 0 : index
    %c0_4 = arith.constant 0 : index
    %3 = vector.load %arg3[%c0_3, %c0_4] : memref<1x128xf32, #tpu.memory_space<vmem>>, vector<1x128xf32>
    %4 = vector.broadcast %3 : vector<1x128xf32> to vector<8x128xf32>
    %5 = arith.addf %2, %4 : vector<8x128xf32>
    %c0_5 = arith.constant 0 : index
    %c0_6 = arith.constant 0 : index
    %6 = vector.load %arg4[%c0_5, %c0_6] : memref<8x128xf32, #tpu.memory_space<vmem>>, vector<8x128xf32>
    tpu.vector_store %arg4[%c0_5, %c0_6], %5 {strides = array<i32>} : memref<8x128xf32, #tpu.memory_space<vmem>>, vector<8x128xf32>,
    return
  }
  func.func @transform_0(%arg0: i32) -> (i32, i32) {
    %c0_i32 = arith.constant 0 : i32
    %c0_i32_0 = arith.constant 0 : i32
    return %arg0, %c0_i32 : i32, i32
  }
  func.func @transform_1(%arg0: i32) -> (i32, i32) {
    %c0_i32 = arith.constant 0 : i32
    %c0_i32_0 = arith.constant 0 : i32
    %c0_i32_1 = arith.constant 0 : i32
    return %c0_i32, %c0_i32_0 : i32, i32
  }
  func.func @transform_2(%arg0: i32) -> (i32, i32) {
    %c0_i32 = arith.constant 0 : i32
    %c0_i32_0 = arith.constant 0 : i32
    %c0_i32_1 = arith.constant 0 : i32
    return %c0_i32, %c0_i32_0 : i32, i32
  }
  func.func @transform_3(%arg0: i32) -> (i32, i32) {
    %c0_i32 = arith.constant 0 : i32
    %c0_i32_0 = arith.constant 0 : i32
    return %arg0, %c0_i32 : i32, i32
  }
}

</mosaic_0001>

<bundles_post_ra>
// kernel: tpu_custom_call.1
= control target key start
LH: loop header
LB: loop body
LE: loop exit
PB: predicated region body
PF: predicated region fallthrough
CT: control target
= control target key end

     0   :  { %8 = vsyncpa [#allocation3], 0  ;;  %s317_s0 = inlined_call_operand.hbm [shape: f32[8,128], index: 0, kind: input, shape index: {}]   ;;  %s318_s1 = inlined_call_operand.hbm [shape: f32[128,128], index: 1, kind: input, shape index: {}]   ;;  %s319_s2 = inlined_call_operand.vmem [shape: f32[1,128], index: 2, kind: input, shape index: {}]   ;;  %s320_s3 = inlined_call_operand.hbm [shape: f32[8,128], index: 3, kind: output, shape index: {}]  }
   0x1   :  { %9 = vsyncpa [#allocation6], 0 }
   0x2   :  { %10 = vsyncpa [#allocation4], 0  ;;  %s278_s12 = smov [#allocation2]   ;;  %s279_s14 = smov [#allocation5]  }
   0x3   :  { %s17_s13 = sshll.u32 %s278_s12, 4  ;;  %s26_s15 = sshll.u32 %s279_s14, 4  ;;  %s18_s13 = int_to_ptr.vmem [resolvable:$true] %s17_s13  ;;  %s27_s15 = int_to_ptr.vmem [resolvable:$true] %s26_s15 }
   0x4   :  { %s220_s16 = scalar_lea.vmem %s18_s13, 128  ;;  %p225_p1 = scmp.lt.s32.totalorder %s18_s13, %s18_s13 }
   0x5   :  { %p221_p0 = scmp.ne.s32.totalorder %s18_s13, %s220_s16  ;;  %p226_p2 = scmp.lt.s32.totalorder %s220_s16, %s220_s16 }
   0x7   :  { %p227_p3 = por %p226_p2, %p225_p1 }
   0x9   :  { %p228_p4 = pnand %p227_p3, %p221_p0 }
   0xb   :  { %231 = shalt.err (!%p228_p4)
}
   0xc   :  { %20 = dma.hbm_to_vmem [thread:$0]  %s317_s0, 128, %s18_s13, [#allocation3]  }
   0xd   :  { %s240_s19 = scalar_lea.vmem %s27_s15, 2048  ;;  %p245_p6 = scmp.lt.s32.totalorder %s27_s15, %s27_s15 }
   0xe   :  { %p241_p5 = scmp.ne.s32.totalorder %s27_s15, %s240_s19  ;;  %p246_p7 = scmp.lt.s32.totalorder %s240_s19, %s240_s19 }
  0x10   :  { %p247_p8 = por %p246_p7, %p245_p6 }
  0x12   :  { %p248_p9 = pnand %p247_p8, %p241_p5 }
  0x14   :  { %251 = shalt.err (!%p248_p9)
}
  0x15   :  { %s280_s20 = smov 128   ;;  %s281_s21 = smov 8  }
  0x16   :  { %32 = dma.hbm_to_vmem [thread:$0]  %s318_s1, 2048, %s27_s15, [#allocation6], %s280_s20, %s280_s20, %s281_s21  }
  0x17   :  { %272 = dma.done.wait [#allocation3], 128  }
  0x18   :  { %273 = vsyncadd [#allocation3], 4294967168 }
  0x19   :  { %274 = dma.done.wait [#allocation6], 2048  }
  0x1a   :  { %275 = vsyncadd [#allocation6], 4294965248  ;;  %v282_v0 = vmov 0.0   ;;  %vm283_vm0 = vmmov 0   ;;  %v57_v1 = vld [vmem:[#allocation5 + $0x78] sm:$0xff]  ;;  %v56_v2 = vld [vmem:[#allocation5 + $0x70] sm:$0xff] }
  0x1b   :  { %170 = vmatprep.subr.mxu0 %v282_v0  ;;  %202 = vmatprep.mubr.msk.f32.mxu0 %vm283_vm0, %v282_v0  ;;  %v55_v3 = vld [vmem:[#allocation5 + $0x68] sm:$0xff]  ;;  %v54_v4 = vld [vmem:[#allocation5 + $0x60] sm:$0xff]  ;;  %v53_v5 = vld [vmem:[#allocation5 + $0x58] sm:$0xff]  ;;  %s284_s24 = smov [#allocation7]  }
  0x1c   :  { %171 = vmatpush3.msra.mxu0 %v57_v1  ;;  %v52_v6 = vld [vmem:[#allocation5 + $0x50] sm:$0xff]  ;;  %v51_v7 = vld [vmem:[#allocation5 + $0x48] sm:$0xff]  ;;  %v50_v8 = vld [vmem:[#allocation5 + $0x40] sm:$0xff]  ;;  %s142_s25 = sshll.u32 %s284_s24, 4  ;;  %s143_s25 = int_to_ptr.vmem [resolvable:$true] %s142_s25 }
  0x1d   :  { %172 = vmatprep.subr.mxu0 %v282_v0  ;;  %v49_v9 = vld [vmem:[#allocation5 + $0x38] sm:$0xff]  ;;  %v48_v10 = vld [vmem:[#allocation5 + $0x30] sm:$0xff]  ;;  %v47_v11 = vld [vmem:[#allocation5 + $0x28] sm:$0xff]  ;;  %s252_s26 = scalar_lea.vmem %s143_s25, 128  ;;  %p257_p11 = scmp.lt.s32.totalorder %s143_s25, %s143_s25 }
  0x1e   :  { %173 = vmatpush3.msra.mxu0 %v56_v2  ;;  %v46_v12 = vld [vmem:[#allocation5 + $0x20] sm:$0xff]  ;;  %v45_v13 = vld [vmem:[#allocation5 + $0x18] sm:$0xff]  ;;  %v44_v14 = vld [vmem:[#allocation5 + $0x10] sm:$0xff]  ;;  %p253_p10 = scmp.ne.s32.totalorder %s143_s25, %s252_s26  ;;  %p258_p12 = scmp.lt.s32.totalorder %s252_s26, %s252_s26 }
  0x1f   :  { %174 = vmatprep.subr.mxu0 %v282_v0  ;;  %v43_v15 = vld [vmem:[#allocation5 + $0x8] sm:$0xff]  ;;  %v42_v16 = vld [vmem:[#allocation5] sm:$0xff]  ;;  %v41_v17 = vld [vmem:[#allocation2] sm:$0xff] }
  0x20   :  { %175 = vmatpush3.msra.mxu0 %v55_v3  ;;  %v152_v18 = vld [vmem:[%s319_s2] ss:$0 sm:$0xff]  ;;  %p259_p13 = por %p258_p12, %p257_p11 }
  0x21   :  { %176 = vmatprep.subr.mxu0 %v282_v0 }
  0x22   :  { %177 = vmatpush3.msra.mxu0 %v54_v4  ;;  %p260_p0 = pnand %p259_p13, %p253_p10 }
  0x23   :  { %178 = vmatprep.subr.mxu0 %v282_v0 }
  0x24   :  { %179 = vmatpush3.msra.mxu0 %v53_v5 }
  0x25   :  { %180 = vmatprep.subr.mxu0 %v282_v0 }
  0x26   :  { %181 = vmatpush3.msra.mxu0 %v52_v6 }
  0x27   :  { %182 = vmatprep.subr.mxu0 %v282_v0 }
  0x28   :  { %183 = vmatpush3.msra.mxu0 %v51_v7 }
  0x29   :  { %184 = vmatprep.subr.mxu0 %v282_v0 }
  0x2a   :  { %185 = vmatpush3.msra.mxu0 %v50_v8 }
  0x2b   :  { %186 = vmatprep.subr.mxu0 %v282_v0 }
  0x2c   :  { %187 = vmatpush3.msra.mxu0 %v49_v9 }
  0x2d   :  { %188 = vmatprep.subr.mxu0 %v282_v0 }
  0x2e   :  { %189 = vmatpush3.msra.mxu0 %v48_v10 }
  0x2f   :  { %190 = vmatprep.subr.mxu0 %v282_v0 }
  0x30   :  { %191 = vmatpush3.msra.mxu0 %v47_v11 }
  0x31   :  { %192 = vmatprep.subr.mxu0 %v282_v0 }
  0x32   :  { %193 = vmatpush3.msra.mxu0 %v46_v12 }
  0x33   :  { %194 = vmatprep.subr.mxu0 %v282_v0 }
  0x34   :  { %195 = vmatpush3.msra.mxu0 %v45_v13 }
  0x35   :  { %196 = vmatprep.subr.mxu0 %v282_v0 }
  0x36   :  { %197 = vmatpush3.msra.mxu0 %v44_v14 }
  0x37   :  { %198 = vmatprep.subr.mxu0 %v282_v0 }
  0x38   :  { %199 = vmatpush3.msra.mxu0 %v43_v15 }
  0x39   :  { %200 = vmatprep.subr.mxu0 %v282_v0 }
  0x3a   :  { %201 = vmatpush3.msra.mxu0 %v42_v16 }
  0x3b   :  { %203 = vmatmul.mubr.f32.vlgmr.msra.gmra.mxu0 %v41_v17 }
  0xfb   :  { %v131_v19 = vpop.f32.mrf.mxu0 }
  0xfc   :  { %v132_v20 = vadd.f32 %v152_v18, %v131_v19 }
  0xfd   :  { %v204_v21 = vpop.f32.mrf.mxu0 }
  0xfe   :  { %135 = vst [vmem:[#allocation7] sm:$0xff] %v132_v20 }
  0xff   :  { %263 = shalt.err (!%p260_p0)
}
 0x100   :  { %145 = dma.vmem_to_hbm [thread:$0]  %s143_s25, 128, %s320_s3, [#allocation4]  }
 0x101   :  { %276 = dma.done.wait [#allocation4], 128  }
 0x102   :  { %277 = vsyncadd [#allocation4], 4294967168 }
 0x103   :  { %149 = vsyncpa [#allocation3], 1 }
 0x104   :  { %150 = vsyncpa [#allocation6], 1 }
 0x105   :  { %151 = vsyncpa [#allocation4], 1 }

</bundles_post_ra>
